<compile_context>
chip_gen: v5e
topology: v5e:2x2
jax: 0.10.0
libtpu: 0.0.40
codegen_flags: <defaults>
</compile_context>

<pallas_src>
import functools
import math

import jax
import jax.numpy as jnp
from jax.experimental import pallas as pl
from jax.experimental.pallas import tpu as pltpu

# Older releases named this TPUCompilerParams; keep a fallback so the script runs.
_CompilerParams = getattr(pltpu, "CompilerParams", None) or getattr(
    pltpu, "TPUCompilerParams"
)

_SQRT_HALF = 0.7071067811865476


def _round_up(x, m):
    return ((x + m - 1) // m) * m


def _largest_divisor_tile(dim, candidates):
    """Largest candidate that divides `dim`; None if none divides."""
    for c in candidates:
        if c <= dim and dim % c == 0:
            return c
    return None


def _erf_poly(x):
    """erf via Abramowitz & Stegun 7.1.26 (|abs err| <= 1.5e-7).

    Built only from mul/add/div/exp (VPU + EUP) so it lowers on every TPU
    generation; matches PyTorch's exact-erf GELU to f32 working precision.
    """
    p = 0.3275911
    a1, a2, a3, a4, a5 = (
        0.254829592,
        -0.284496736,
        1.421413741,
        -1.453152027,
        1.061405429,
    )
    s = jnp.sign(x)
    ax = jnp.abs(x)
    t = 1.0 / (1.0 + p * ax)
    poly = ((((a5 * t + a4) * t + a3) * t + a2) * t + a1) * t
    return s * (1.0 - poly * jnp.exp(-(ax * ax)))


def _epilogue(y, b_ref, activation):
    """f32 bias-add + activation (matches module: activation_fn(y, bias=...))."""
    if b_ref is not None:
        y = y + b_ref[...]
    if activation is None:
        return y
    if activation == "relu":
        return jnp.maximum(y, 0.0)
    if activation == "gelu":
        # Exact (erf-based) GELU, like PyTorch nn.GELU's default.
        return 0.5 * y * (1.0 + _erf_poly(y * _SQRT_HALF))
    raise ValueError(f"unsupported activation: {activation}")


def _linear_kernel_single_k(*refs, activation, has_bias, precision):
    """Single reduction step: write dot + bias + activation straight to o_ref."""
    if has_bias:
        x_ref, w_ref, b_ref, o_ref = refs
    else:
        x_ref, w_ref, o_ref = refs
        b_ref = None
    y = jax.lax.dot_general(
        x_ref[...],
        w_ref[...],
        dimension_numbers=(((1,), (0,)), ((), ())),  # (tm,K) x (K,tn)
        preferred_element_type=jnp.float32,
        precision=precision,
    )
    o_ref[...] = _epilogue(y, b_ref, activation).astype(o_ref.dtype)


def _linear_kernel_multi_k(*refs, activation, has_bias, precision):
    """K-tiled reduction with a persistent f32 VMEM accumulator."""
    if has_bias:
        x_ref, w_ref, b_ref, o_ref, acc_ref = refs
    else:
        x_ref, w_ref, o_ref, acc_ref = refs
        b_ref = None

    @pl.when(pl.program_id(2) == 0)
    def _():
        acc_ref[...] = jnp.zeros_like(acc_ref)

    acc_ref[...] += jax.lax.dot_general(
        x_ref[...],
        w_ref[...],
        dimension_numbers=(((1,), (0,)), ((), ())),  # (tm,tk) x (tk,tn)
        preferred_element_type=jnp.float32,
        precision=precision,
    )

    @pl.when(pl.program_id(2) == pl.num_programs(2) - 1)
    def _():
        o_ref[...] = _epilogue(acc_ref[...], b_ref, activation).astype(o_ref.dtype)


def pallas_linear(
    x,
    weight,
    bias=None,
    *,
    activation=None,
    compute_dtype=jnp.bfloat16,
    precision=None,
    tm=None,
    tn=None,
    tk=None,
    vmem_limit_bytes=None,
):
    """Fused linear: x (..., K); weight (N, K) (PyTorch layout); bias (N,) or None."""
    if activation not in (None, "relu", "gelu"):
        raise ValueError(f"unsupported activation: {activation}")

    orig_shape = x.shape
    out_dtype = x.dtype
    K = orig_shape[-1]
    N, K2 = weight.shape
    assert K == K2, (K, K2)

    x2d = x.reshape(-1, K)
    M = x2d.shape[0]

    cdt = jnp.dtype(compute_dtype) if compute_dtype is not None else jnp.dtype(x2d.dtype)
    if x2d.dtype != cdt:
        x2d = x2d.astype(cdt)
    # (K, N) layout for the kernel: standard (1,0) contraction on the MXU.
    # One-time transpose; for a constant parameter under jit XLA hoists/CSEs it.
    w_kn = weight.T
    if w_kn.dtype != cdt:
        w_kn = w_kn.astype(cdt)

    # Exact-f32 parity when the caller asked for f32 compute.
    if precision is None and cdt == jnp.float32:
        precision = jax.lax.Precision.HIGHEST

    elt = cdt.itemsize
    out_elt = jnp.dtype(out_dtype).itemsize

    # ---- Tile selection (prefer tiles that avoid any padding) ---------------
    if tk is None:
        if K <= 2048:
            tk = K  # full-K block: always legal, single reduction step, no padding
        else:
            tk = _largest_divisor_tile(K, (2048, 1024, 512, 256, 128)) or 512
    if tn is None:
        if N <= 512:
            tn = N  # full-N block, no padding
        else:
            tn = _largest_divisor_tile(N, (512, 256, 128)) or 512
    if tm is None:
        if M <= 512:
            tm = M  # full-M block, no padding (block dim == full array dim is legal)
        else:
            best_c, best_mp = 512, _round_up(M, 512)
            for c in (256, 128):
                mp = _round_up(M, c)
                if mp < best_mp:
                    best_c, best_mp = c, mp
            tm = best_c

    Mp, Np, Kp = _round_up(M, tm), _round_up(N, tn), _round_up(K, tk)

    # v7x has 2 TensorCores: when the whole batch is one M block, split N so a
    # 'parallel' grid axis has extent >= 2 (harmless on single-TC v5e/v6e).
    if Mp // tm == 1 and Np // tn == 1 and N % 256 == 0:
        tn = N // 2

    m_blocks, n_blocks, k_blocks = Mp // tm, Np // tn, Kp // tk
    multi_k = k_blocks > 1

    # ---- Pad only what is strictly needed (usually nothing) -----------------
    if (Mp, Kp) != (M, K):
        x2d = jnp.pad(x2d, ((0, Mp - M), (0, Kp - K)))
    if (Kp, Np) != (K, N):
        w_kn = jnp.pad(w_kn, ((0, Kp - K), (0, Np - N)))

    has_bias = bias is not None
    inputs = [x2d, w_kn]
    if has_bias:
        b2d = bias.astype(jnp.float32).reshape(1, N)
        if Np != N:
            b2d = jnp.pad(b2d, ((0, 0), (0, Np - N)))
        inputs.append(b2d)

    # ---- Grid / specs --------------------------------------------------------
    if multi_k:
        grid = (m_blocks, n_blocks, k_blocks)
        x_map = lambda i, j, k: (i, k)
        w_map = lambda i, j, k: (k, j)
        b_map = lambda i, j, k: (0, j)
        o_map = lambda i, j, k: (i, j)
        semantics = ("parallel", "parallel", "arbitrary")
        scratch = [pltpu.VMEM((tm, tn), jnp.float32)]
        kernel = functools.partial(
            _linear_kernel_multi_k,
            activation=activation,
            has_bias=has_bias,
            precision=precision,
        )
    else:
        grid = (m_blocks, n_blocks)
        x_map = lambda i, j: (i, 0)
        w_map = lambda i, j: (0, j)
        b_map = lambda i, j: (0, j)
        o_map = lambda i, j: (i, j)
        semantics = ("parallel", "parallel")
        scratch = []
        kernel = functools.partial(
            _linear_kernel_single_k,
            activation=activation,
            has_bias=has_bias,
            precision=precision,
        )

    # Weight spec: deeper buffering on small-M (weight-streaming-bound) shapes.
    w_spec = pl.BlockSpec((tk, tn), w_map)
    w_bufs = 2
    if m_blocks == 1 and n_blocks * k_blocks >= 3 and hasattr(pl, "Buffered"):
        try:
            w_spec = pl.BlockSpec((tk, tn), w_map, pipeline_mode=pl.Buffered(3))
            w_bufs = 3
        except TypeError:  # older jax without pipeline_mode
            pass

    in_specs = [pl.BlockSpec((tm, tk), x_map), w_spec]
    if has_bias:
        in_specs.append(pl.BlockSpec((1, tn), b_map))

    # ---- VMEM budget, generation-aware ---------------------------------------
    if vmem_limit_bytes is None:
        tile_bytes = (
            2 * tm * tk * elt
            + w_bufs * tk * tn * elt
            + 2 * tm * tn * out_elt
            + (tm * tn * 4 if multi_k else 0)
            + (2 * tn * 4 if has_bias else 0)
        )
        try:
            phys = getattr(pltpu.get_tpu_info(), "vmem_capacity_bytes", 64 * 1024 * 1024)
        except Exception:
            phys = 64 * 1024 * 1024  # assume the smallest (v7x) if the query fails
        hard_cap = int(phys) * 3 // 4  # headroom for compiler scratch / semaphores
        vmem_limit_bytes = int(min(max(2 * tile_bytes, 32 * 1024 * 1024), hard_cap))

    cost = pl.CostEstimate(
        flops=2 * M * N * K,
        transcendentals=M * N if activation == "gelu" else 0,
        bytes_accessed=elt * (Mp * Kp + Kp * Np)
        + out_elt * Mp * Np
        + (4 * Np if has_bias else 0),
    )

    out_p = pl.pallas_call(
        kernel,
        out_shape=jax.ShapeDtypeStruct((Mp, Np), out_dtype),
        grid_spec=pltpu.PrefetchScalarGridSpec(
            num_scalar_prefetch=0,
            grid=grid,
            in_specs=in_specs,
            out_specs=pl.BlockSpec((tm, tn), o_map),
            scratch_shapes=scratch,
        ),
        compiler_params=_CompilerParams(
            dimension_semantics=semantics,
            vmem_limit_bytes=vmem_limit_bytes,
        ),
        cost_estimate=cost,
    )(*inputs)

    out = out_p if (Mp == M and Np == N) else out_p[:M, :N]
    return out.reshape(orig_shape[:-1] + (N,))


def init_linear_params(key, in_features, out_features, use_bias=True):
    """Deterministic re-implementation of the module's _reset_parameters():
    kaiming_uniform_(a=sqrt(5)) on weight == U(-1/sqrt(fan_in), 1/sqrt(fan_in));
    bias ~ U(-1/sqrt(fan_in), 1/sqrt(fan_in))."""
    kw, kb = jax.random.split(key)
    bound = 1.0 / math.sqrt(in_features) if in_features > 0 else 0.0
    weight = jax.random.uniform(
        kw, (out_features, in_features), jnp.float32, minval=-bound, maxval=bound
    )
    bias = None
    if use_bias:
        bias = jax.random.uniform(
            kb, (out_features,), jnp.float32, minval=-bound, maxval=bound
        )
    return weight, bias


if __name__ == "__main__":
    key = jax.random.PRNGKey(0)
    k_x1, k_p1, k_x2, k_p2, k_x3, k_p3 = jax.random.split(key, 6)
    hp = jax.lax.Precision.HIGHEST

    # ---- Case 1: exact-f32 path (compute_dtype=None -> HIGHEST), bias, no act ----
    batch, in_f, out_f = 16, 256, 128
    x1 = jax.random.normal(k_x1, (batch, in_f), dtype=jnp.float32)
    w1, b1 = init_linear_params(k_p1, in_f, out_f, use_bias=True)
    out1 = jax.block_until_ready(
        pallas_linear(x1, w1, b1, activation=None, compute_dtype=None)
    )
    ref1 = jnp.dot(x1, w1.T, precision=hp) + b1[None, :]
    assert out1.shape == (batch, out_f)
    assert jnp.allclose(out1, ref1, atol=1e-4, rtol=1e-4), float(
        jnp.max(jnp.abs(out1 - ref1))
    )

    # ---- Case 2: ragged shapes (no padding needed) + relu + default bf16 compute --
    b2, in2, out2 = 5, 200, 96
    x2 = jax.random.normal(k_x2, (b2, in2), dtype=jnp.float32)
    w2, bias2 = init_linear_params(k_p2, in2, out2, use_bias=True)
    out2a = jax.block_until_ready(pallas_linear(x2, w2, bias2, activation="relu"))
    ref2 = jnp.maximum(jnp.dot(x2, w2.T, precision=hp) + bias2[None, :], 0.0)
    assert out2a.shape == (b2, out2)
    assert jnp.allclose(out2a, ref2, atol=3e-2, rtol=3e-2), float(
        jnp.max(jnp.abs(out2a - ref2))
    )

    # ---- Case 3: 3-D input, multi-K accumulation (forced tk), gelu, no bias -------
    b3, s3, in3, out3 = 2, 8, 512, 256
    x3 = jax.random.normal(k_x3, (b3, s3, in3), dtype=jnp.float32)
    w3, _ = init_linear_params(k_p3, in3, out3, use_bias=False)
    out3a = jax.block_until_ready(
        pallas_linear(x3, w3, None, activation="gelu", tk=128)
    )
    ref3 = jax.nn.gelu(jnp.dot(x3, w3.T, precision=hp), approximate=False)
    assert out3a.shape == (b3, s3, out3)
    assert jnp.allclose(out3a, ref3, atol=3e-2, rtol=3e-2), float(
        jnp.max(jnp.abs(out3a - ref3))
    )

    print("KERNEL_OK")
</pallas_src>

<mosaic_0001>
module attributes {stable_mosaic.version = 11 : i64} {
  func.func @_linear_kernel_single_k(%arg0: i32, %arg1: i32, %arg2: memref<16x256xf32, #tpu.memory_space<vmem>>, %arg3: memref<256x128xf32, #tpu.memory_space<vmem>>, %arg4: memref<1x128xf32, #tpu.memory_space<vmem>>, %arg5: memref<16x128xf32, #tpu.memory_space<vmem>>) attributes {dimension_semantics = [#tpu.dimension_semantics<parallel>, #tpu.dimension_semantics<parallel>], iteration_bounds = array<i64: 1, 1>, scalar_prefetch = 0 : i64, scratch_operands = 0 : i64, tpu.core_type = #tpu.core_type<tc>, window_params = [{transform_indices = @transform_0, window_bounds = array<i64: 16, 256>}, {transform_indices = @transform_1, window_bounds = array<i64: 256, 128>}, {transform_indices = @transform_2, window_bounds = array<i64: 1, 128>}, {transform_indices = @transform_3, window_bounds = array<i64: 16, 128>}]} {
    %c0 = arith.constant 0 : index
    %c0_0 = arith.constant 0 : index
    %0 = vector.load %arg2[%c0, %c0_0] : memref<16x256xf32, #tpu.memory_space<vmem>>, vector<16x256xf32>
    %c0_1 = arith.constant 0 : index
    %c0_2 = arith.constant 0 : index
    %1 = vector.load %arg3[%c0_1, %c0_2] : memref<256x128xf32, #tpu.memory_space<vmem>>, vector<256x128xf32>
    %cst = arith.constant dense<0.000000e+00> : vector<16x128xf32>
    %2 = tpu.matmul %0, %1, %cst {dimension_numbers = #tpu.dot_dimension_numbers<[1], [0], [0], [1], [0, 0, 1, 1], [], []>, precision = #tpu.contract_precision<fp32>} : vector<16x256xf32>, vector<256x128xf32>, vector<16x128xf32> -> vector<16x128xf32>
    %c0_3 = arith.constant 0 : index
    %c0_4 = arith.constant 0 : index
    %3 = vector.load %arg4[%c0_3, %c0_4] : memref<1x128xf32, #tpu.memory_space<vmem>>, vector<1x128xf32>
    %4 = vector.broadcast %3 : vector<1x128xf32> to vector<16x128xf32>
    %5 = arith.addf %2, %4 : vector<16x128xf32>
    %c0_5 = arith.constant 0 : index
    %c0_6 = arith.constant 0 : index
    %6 = vector.load %arg5[%c0_5, %c0_6] : memref<16x128xf32, #tpu.memory_space<vmem>>, vector<16x128xf32>
    tpu.vector_store %arg5[%c0_5, %c0_6], %5 {strides = array<i32>} : memref<16x128xf32, #tpu.memory_space<vmem>>, vector<16x128xf32>,
    return
  }
  func.func @transform_0(%arg0: i32, %arg1: i32) -> (i32, i32) {
    %c0_i32 = arith.constant 0 : i32
    %c0_i32_0 = arith.constant 0 : i32
    return %arg0, %c0_i32 : i32, i32
  }
  func.func @transform_1(%arg0: i32, %arg1: i32) -> (i32, i32) {
    %c0_i32 = arith.constant 0 : i32
    %c0_i32_0 = arith.constant 0 : i32
    return %c0_i32, %arg1 : i32, i32
  }
  func.func @transform_2(%arg0: i32, %arg1: i32) -> (i32, i32) {
    %c0_i32 = arith.constant 0 : i32
    %c0_i32_0 = arith.constant 0 : i32
    return %c0_i32, %arg1 : i32, i32
  }
  func.func @transform_3(%arg0: i32, %arg1: i32) -> (i32, i32) {
    %c0_i32 = arith.constant 0 : i32
    return %arg0, %arg1 : i32, i32
  }
}

</mosaic_0001>

<bundles_post_ra>
// kernel: tpu_custom_call.1
= control target key start
LH: loop header
LB: loop body
LE: loop exit
PB: predicated region body
PF: predicated region fallthrough
CT: control target
= control target key end

     0   :  { %8 = vsyncpa [#allocation3], 0  ;;  %s1511_s0 = inlined_call_operand.hbm [shape: f32[16,256], index: 0, kind: input, shape index: {}]   ;;  %s1512_s1 = inlined_call_operand.hbm [shape: f32[256,128], index: 1, kind: input, shape index: {}]   ;;  %s1513_s2 = inlined_call_operand.vmem [shape: f32[1,128], index: 2, kind: input, shape index: {}]   ;;  %s1514_s3 = inlined_call_operand.hbm [shape: f32[16,128], index: 3, kind: output, shape index: {}]  }
   0x1   :  { %9 = vsyncpa [#allocation6], 0 }
   0x2   :  { %10 = vsyncpa [#allocation4], 0  ;;  %s15_s14 = sshll.u32 %s1511_s0, 4  ;;  %s939_s15 = smov [#allocation2]   ;;  %s16_s14 = int_to_ptr.hbm [resolvable:$true] %s15_s14 }
   0x3   :  { %s17_s16 = sshll.u32 %s939_s15, 4  ;;  %s28_s19 = sshll.u32 %s1512_s1, 4  ;;  %s18_s16 = int_to_ptr.vmem [resolvable:$true] %s17_s16  ;;  %s29_s19 = int_to_ptr.hbm [resolvable:$true] %s28_s19 }
   0x4   :  { %s940_s20 = smov 256   ;;  %s941_s21 = smov 16  }
   0x5   :  { %23 = dma.hbm_to_vmem [thread:$0]  %s16_s14, 512, %s18_s16, [#allocation3], %s940_s20, %s940_s20, %s941_s21  }
   0x6   :  { %s942_s22 = smov [#allocation5]   ;;  %s943_s24 = smov 128  }
   0x7   :  { %s30_s23 = sshll.u32 %s942_s22, 4  ;;  %s944_s25 = smov 8   ;;  %s31_s23 = int_to_ptr.vmem [resolvable:$true] %s30_s23 }
   0x8   :  { %36 = dma.hbm_to_vmem [thread:$0]  %s29_s19, 4096, %s31_s23, [#allocation6], %s943_s24, %s943_s24, %s944_s25  }
   0x9   :  { %933 = dma.done.wait [#allocation3], 512  }
   0xa   :  { %934 = vsyncadd [#allocation3], 4294966784 }
   0xb   :  { %935 = dma.done.wait [#allocation6], 4096  }
   0xc   :  { %936 = vsyncadd [#allocation6], 4294963200  ;;  %v66_v0 = vld [vmem:[#allocation5 + $0x78] sm:$0xff]  ;;  %v65_v1 = vld [vmem:[#allocation5 + $0x70] sm:$0xff]  ;;  %s839_s29 = sshll.u32 %s1514_s3, 4  ;;  %s840_s29 = int_to_ptr.hbm [resolvable:$true] %s839_s29 }
   0xd   :  { %v64_v2 = vld [vmem:[#allocation5 + $0x68] sm:$0xff]  ;;  %v975_v3 = vand.u32 4294901760, %v66_v0  ;;  %v977_v4 = vand.u32 4294901760, %v65_v1  ;;  %v63_v6 = vld [vmem:[#allocation5 + $0x60] sm:$0xff]  ;;  %v62_v7 = vld [vmem:[#allocation5 + $0x58] sm:$0xff] }
   0xe   :  { %v979_v5 = vand.u32 4294901760, %v64_v2  ;;  %v61_v8 = vld [vmem:[#allocation5 + $0x50] sm:$0xff]  ;;  %v981_v9 = vand.u32 4294901760, %v63_v6  ;;  %v983_v10 = vand.u32 4294901760, %v62_v7  ;;  %v60_v12 = vld [vmem:[#allocation5 + $0x48] sm:$0xff]  ;;  %v59_v13 = vld [vmem:[#allocation5 + $0x40] sm:$0xff] }
   0xf   :  { %v985_v11 = vand.u32 4294901760, %v61_v8  ;;  %88 = vmatpush.msra.mxu0 %v975_v3  ;;  %v989_v14 = vsub.f32 %v66_v0, %v975_v3  ;;  %v992_v15 = vsub.f32 %v65_v1, %v977_v4  ;;  %301 = vmatpush.msra.mxu3 %v975_v3  ;;  %v998_v17 = vand.u32 4294901760, %v60_v12  ;;  %v58_v18 = vld [vmem:[#allocation5 + $0x38] sm:$0xff]  ;;  %v57_v26 = vld [vmem:[#allocation5 + $0x30] sm:$0xff]  ;;  %v56_v36 = vld [vmem:[#allocation5 + $0x28] sm:$0xff] }
  0x10   :  { %v996_v16 = vsub.f32 %v64_v2, %v979_v5  ;;  %v1001_v19 = vsub.f32 %v63_v6, %v981_v9  ;;  %v1004_v20 = vsub.f32 %v62_v7, %v983_v10  ;;  %v1006_v21 = vand.u32 4294901760, %v59_v13  ;;  %v55_v42 = vld [vmem:[#allocation5 + $0x20] sm:$0xff]  ;;  %v54_v48 = vld [vmem:[#allocation5 + $0x18] sm:$0xff]  ;;  %v53_v54 = vld [vmem:[#allocation5 + $0x10] sm:$0xff] }
  0x11   :  { %90 = vmatpush.msra.mxu0 %v977_v4  ;;  %243 = vmatpush.msra.mxu2 %v989_v14  ;;  %v138_v22 = vand.u32 4294901760, %v989_v14  ;;  %v1531_v23 = vand.u32 4294901760, %v992_v15  ;;  %v1014_v25 = vsub.f32 %v61_v8, %v985_v11  ;;  %v1018_v28 = vand.u32 4294901760, %v58_v18  ;;  %v82_v59 = vld [vmem:[#allocation5 + $0xf8] sm:$0xff]  ;;  %v52_v61 = vld [vmem:[#allocation5 + $0x8] sm:$0xff]  ;;  %v81_v2 = vld [vmem:[#allocation5 + $0xf0] sm:$0xff] }
  0x12   :  { %v1528_v24 = vand.u32 4294901760, %v996_v16  ;;  %303 = vmatpush.msra.mxu3 %v977_v4  ;;  %v1527_v27 = vand.u32 4294901760, %v1001_v19  ;;  %v1021_v29 = vsub.f32 %v60_v12, %v998_v17  ;;  %v1524_v33 = vand.u32 4294901760, %v1004_v20  ;;  %v51_v7 = vld [vmem:[#allocation5] sm:$0xff] }
  0x13   :  { %92 = vmatpush.msra.mxu0 %v979_v5  ;;  %246 = vmatpush.msra.mxu2 %v992_v15  ;;  %v139_v30 = vsub.f32 %v989_v14, %v138_v22  ;;  %v145_v31 = vsub.f32 %v992_v15, %v1531_v23  ;;  %v1036_v34 = vand.u32 4294901760, %v57_v26  ;;  %v1039_v35 = vsub.f32 %v59_v13, %v1006_v21 }
  0x14   :  { %v151_v32 = vsub.f32 %v996_v16, %v1528_v24  ;;  %305 = vmatpush.msra.mxu3 %v979_v5  ;;  %v157_v39 = vsub.f32 %v1001_v19, %v1527_v27  ;;  %v1523_v40 = vand.u32 4294901760, %v1014_v25  ;;  %v1521_v41 = vand.u32 4294901760, %v1021_v29 }
  0x15   :  { %94 = vmatpush.msra.mxu0 %v981_v9  ;;  %v140_v37 = vand.u32 4294901760, %v139_v30  ;;  %249 = vmatpush.msra.mxu2 %v996_v16  ;;  %v146_v38 = vand.u32 4294901760, %v145_v31  ;;  %v163_v44 = vsub.f32 %v1004_v20, %v1524_v33  ;;  %v1053_v45 = vand.u32 4294901760, %v56_v36  ;;  %v80_v30 = vld [vmem:[#allocation5 + $0xe8] sm:$0xff] }
  0x16   :  { %307 = vmatpush.msra.mxu3 %v981_v9  ;;  %v152_v43 = vand.u32 4294901760, %v151_v32  ;;  %v1056_v46 = vsub.f32 %v58_v18, %v1018_v28  ;;  %v1520_v47 = vand.u32 4294901760, %v1039_v35  ;;  %v158_v49 = vand.u32 4294901760, %v157_v39 }
  0x17   :  { %96 = vmatpush.msra.mxu0 %v983_v10  ;;  %141 = vmatpush.msra.mxu1 %v140_v37  ;;  %v169_v50 = vsub.f32 %v1014_v25, %v1523_v40  ;;  %v1065_v51 = vand.u32 4294901760, %v55_v42  ;;  %v1068_v52 = vsub.f32 %v57_v26, %v1036_v34  ;;  %v175_v53 = vsub.f32 %v1021_v29, %v1521_v41 }
  0x18   :  { %252 = vmatpush.msra.mxu2 %v1001_v19  ;;  %309 = vmatpush.msra.mxu3 %v983_v10  ;;  %v164_v55 = vand.u32 4294901760, %v163_v44  ;;  %v1076_v56 = vand.u32 4294901760, %v54_v48  ;;  %v1518_v57 = vand.u32 4294901760, %v1056_v46  ;;  %v1080_v58 = vsub.f32 %v56_v36, %v1053_v45 }
  0x19   :  { %98 = vmatpush.msra.mxu0 %v985_v11  ;;  %147 = vmatpush.msra.mxu1 %v146_v38  ;;  %v181_v60 = vsub.f32 %v1039_v35, %v1520_v47  ;;  %v170_v62 = vand.u32 4294901760, %v169_v50  ;;  %v1088_v63 = vand.u32 4294901760, %v53_v54  ;;  %v1517_v0 = vand.u32 4294901760, %v1068_v52 }
  0x1a   :  { %255 = vmatpush.msra.mxu2 %v1004_v20  ;;  %311 = vmatpush.msra.mxu3 %v985_v11  ;;  %v1092_v1 = vsub.f32 %v55_v42, %v1065_v51  ;;  %v176_v6 = vand.u32 4294901760, %v175_v53  ;;  %v1096_v8 = vand.u32 4294901760, %v82_v59  ;;  %v187_v12 = vsub.f32 %v1056_v46, %v1518_v57  ;;  %v79_v42 = vld [vmem:[#allocation5 + $0xe0] sm:$0xff]  ;;  %v76_v57 = vld [vmem:[#allocation5 + $0xc8] sm:$0xff] }
  0x1b   :  { %100 = vmatpush.msra.mxu0 %v998_v17  ;;  %153 = vmatpush.msra.mxu1 %v152_v43  ;;  %v1102_v13 = vand.u32 4294901760, %v52_v61  ;;  %v1516_v18 = vand.u32 4294901760, %v1080_v58  ;;  %v1106_v26 = vsub.f32 %v54_v48, %v1076_v56  ;;  %v182_v31 = vand.u32 4294901760, %v181_v60 }
  0x1c   :  { %258 = vmatpush.msra.mxu2 %v1014_v25  ;;  %313 = vmatpush.msra.mxu3 %v998_v17  ;;  %v1110_v32 = vand.u32 4294901760, %v81_v2  ;;  %v193_v36 = vsub.f32 %v1068_v52, %v1517_v0  ;;  %v1116_v37 = vand.u32 4294901760, %v51_v7  ;;  %v1515_v38 = vand.u32 4294901760, %v1092_v1 }
  0x1d   :  { %102 = vmatpush.msra.mxu0 %v1006_v21  ;;  %159 = vmatpush.msra.mxu1 %v158_v49  ;;  %v1120_v39 = vsub.f32 %v53_v54, %v1088_v63  ;;  %v1125_v43 = vsub.f32 %v82_v59, %v1096_v8  ;;  %v1127_v44 = vand.u32 4294901760, %v80_v30  ;;  %v188_v48 = vand.u32 4294901760, %v187_v12  ;;  %v78_v59 = vld [vmem:[#allocation5 + $0xd8] sm:$0xff] }
  0x1e   :  { %261 = vmatpush.msra.mxu2 %v1021_v29  ;;  %315 = vmatpush.msra.mxu3 %v1006_v21  ;;  %1536 = vst [vmem:[#allocation11_spill] sm:$0xff] %v1116_v37  ;;  %v199_v49 = vsub.f32 %v1080_v58, %v1516_v18  ;;  %v1519_v50 = vand.u32 4294901760, %v1106_v26  ;;  %v1135_v53 = vsub.f32 %v52_v61, %v1102_v13  ;;  %v194_v60 = vand.u32 4294901760, %v193_v36 }
  0x1f   :  { %104 = vmatpush.msra.mxu0 %v1018_v28  ;;  %165 = vmatpush.msra.mxu1 %v164_v55  ;;  %v1140_v54 = vsub.f32 %v81_v2, %v1110_v32  ;;  %v1142_v55 = vand.u32 4294901760, %v79_v42  ;;  %v1522_v61 = vand.u32 4294901760, %v1120_v39  ;;  %v1525_v2 = vand.u32 4294901760, %v1125_v43 }
  0x20   :  { %264 = vmatpush.msra.mxu2 %v1039_v35  ;;  %317 = vmatpush.msra.mxu3 %v1018_v28  ;;  %v1156_v12 = vsub.f32 %v80_v30, %v1127_v44  ;;  %v200_v36 = vand.u32 4294901760, %v199_v49  ;;  %v1163_v18 = vand.u32 4294901760, %v78_v59  ;;  %v1191_v33 = vand.u32 4294901760, %v76_v57 }
  0x21   :  { %106 = vmatpush.msra.mxu0 %v1036_v34  ;;  %171 = vmatpush.msra.mxu1 %v170_v62  ;;  %v205_v62 = vsub.f32 %v1092_v1, %v1515_v38  ;;  %v211_v38 = vsub.f32 %v1106_v26, %v1519_v50  ;;  %v1529_v30 = vand.u32 4294901760, %v1140_v54  ;;  %v1169_v0 = vsub.f32 %v79_v42, %v1142_v55 }
  0x22   :  { %267 = vmatpush.msra.mxu2 %v1056_v46  ;;  %319 = vmatpush.msra.mxu3 %v1036_v34  ;;  %v217_v49 = vsub.f32 %v1120_v39, %v1522_v61  ;;  %v511_v42 = vsub.f32 %v1125_v43, %v1525_v2  ;;  %v1532_v41 = vand.u32 4294901760, %v1156_v12  ;;  %v1189_v40 = vsub.f32 %v78_v59, %v1163_v18 }
  0x23   :  { %108 = vmatpush.msra.mxu0 %v1053_v45  ;;  %177 = vmatpush.msra.mxu1 %v176_v6  ;;  %v1150_v6 = vsub.f32 %v51_v7, %v1116_v37  ;;  %v1526_v7 = vand.u32 4294901760, %v1135_v53  ;;  %v517_v2 = vsub.f32 %v1140_v54, %v1529_v30  ;;  %v1537_v14 = vand.u32 4294901760, %v992_v15 }
  0x24   :  { %270 = vmatpush.msra.mxu2 %v1068_v52  ;;  %321 = vmatpush.msra.mxu3 %v1053_v45  ;;  %v512_v30 = vand.u32 4294901760, %v511_v42  ;;  %v1538_v42 = vand.u32 4294901760, %v1169_v0  ;;  %v1539_v15 = vand.u32 4294901760, %v996_v16  ;;  %v1541_v16 = vand.u32 4294901760, %v1001_v19 }
  0x25   :  { %110 = vmatpush.msra.mxu0 %v1065_v51  ;;  %183 = vmatpush.msra.mxu1 %v182_v31  ;;  %v77_v31 = vld [vmem:[#allocation5 + $0xd0] sm:$0xff]  ;;  %v1530_v50 = vand.u32 4294901760, %v1150_v6  ;;  %v223_v61 = vsub.f32 %v1135_v53, %v1526_v7  ;;  %v218_v7 = vand.u32 4294901760, %v217_v49  ;;  %v1543_v19 = vand.u32 4294901760, %v1004_v20 }
  0x26   :  { %273 = vmatpush.msra.mxu2 %v1080_v58  ;;  %323 = vmatpush.msra.mxu3 %v1065_v51  ;;  %v1176_v47 = vand.u32 4294901760, %v77_v31  ;;  %v73_v49 = vld [vmem:[#allocation5 + $0xb0] sm:$0xff] }
  0x27   :  { %112 = vmatpush.msra.mxu0 %v1076_v56  ;;  %189 = vmatpush.msra.mxu1 %v188_v48  ;;  %v206_v48 = vand.u32 4294901760, %v205_v62  ;;  %v212_v62 = vand.u32 4294901760, %v211_v38  ;;  %v74_v38 = vld [vmem:[#allocation5 + $0xb8] sm:$0xff]  ;;  %v229_v59 = vsub.f32 %v1150_v6, %v1530_v50  ;;  %v1217_v50 = vsub.f32 %v76_v57, %v1191_v33 }
  0x28   :  { %276 = vmatpush.msra.mxu2 %v1092_v1  ;;  %325 = vmatpush.msra.mxu3 %v1076_v56  ;;  %v1204_v27 = vsub.f32 %v77_v31, %v1176_v47  ;;  %v1219_v23 = vand.u32 4294901760, %v74_v38 }
  0x29   :  { %114 = vmatpush.msra.mxu0 %v1088_v63  ;;  %195 = vmatpush.msra.mxu1 %v194_v60  ;;  %v75_v60 = vld [vmem:[#allocation5 + $0xc0] sm:$0xff] }
  0x2a   :  { %279 = vmatpush.msra.mxu2 %v1106_v26  ;;  %327 = vmatpush.msra.mxu3 %v1088_v63  ;;  %v1206_v24 = vand.u32 4294901760, %v75_v60 }
  0x2b   :  { %116 = vmatpush.msra.mxu0 %v1102_v13  ;;  %201 = vmatpush.msra.mxu1 %v200_v36  ;;  %v224_v36 = vand.u32 4294901760, %v223_v61  ;;  %v72_v61 = vld [vmem:[#allocation5 + $0xa8] sm:$0xff] }
  0x2c   :  { %282 = vmatpush.msra.mxu2 %v1120_v39  ;;  %329 = vmatpush.msra.mxu3 %v1102_v13  ;;  %v1230_v31 = vsub.f32 %v75_v60, %v1206_v24  ;;  %v1242_v60 = vsub.f32 %v74_v38, %v1219_v23  ;;  %v1244_v57 = vand.u32 4294901760, %v72_v61 }
  0x2d   :  { %118 = vmatpush.msra.mxu0 %v1116_v37  ;;  %207 = vmatpush.msra.mxu1 %v206_v48  ;;  %v523_v48 = vsub.f32 %v1156_v12, %v1532_v41  ;;  %v230_v41 = vand.u32 4294901760, %v229_v59 }
  0x2e   :  { %285 = vmatpush.msra.mxu2 %v1135_v53  ;;  %331 = vmatpush.msra.mxu3 %v1116_v37  ;;  %v1232_v37 = vand.u32 4294901760, %v73_v49 }
  0x2f   :  { %348 = vmatpush.msrb.mxu0 %v138_v22  ;;  %213 = vmatpush.msra.mxu1 %v212_v62  ;;  %v518_v22 = vand.u32 4294901760, %v517_v2  ;;  %v529_v62 = vsub.f32 %v1169_v0, %v1538_v42  ;;  %v524_v2 = vand.u32 4294901760, %v523_v48  ;;  %v71_v42 = vld [vmem:[#allocation5 + $0xa0] sm:$0xff] }
  0x30   :  { %288 = vmatpush.msra.mxu2 %v1150_v6  ;;  %513 = vmatpush.msrb.mxu3 %v512_v30 }
  0x31   :  { %352 = vmatpush.msrb.mxu0 %v1537_v14  ;;  %219 = vmatpush.msra.mxu1 %v218_v7  ;;  %v47_v14 = vld [vmem:[#allocation2] sm:$0xff]  ;;  %v1540_v7 = vand.u32 4294901760, %v1189_v40  ;;  %v530_v30 = vand.u32 4294901760, %v529_v62 }
  0x32   :  { %460 = vmatpush.msrb.mxu2 %v1096_v8  ;;  %519 = vmatpush.msrb.mxu3 %v518_v22  ;;  %v1256_v38 = vand.u32 4294901760, %v47_v14  ;;  %v1544_v22 = vand.u32 4294901760, %v1217_v50 }
  0x33   :  { %356 = vmatpush.msrb.mxu0 %v1539_v15  ;;  %225 = vmatpush.msra.mxu1 %v224_v36  ;;  %v535_v59 = vsub.f32 %v1189_v40, %v1540_v7  ;;  %v1542_v36 = vand.u32 4294901760, %v1204_v27  ;;  %v1254_v7 = vsub.f32 %v73_v49, %v1232_v37  ;;  %v1267_v49 = vsub.f32 %v72_v61, %v1244_v57 }
  0x34   :  { %462 = vmatpush.msrb.mxu2 %v1110_v32  ;;  %525 = vmatpush.msrb.mxu3 %v524_v2  ;;  %v547_v62 = vsub.f32 %v1217_v50, %v1544_v22  ;;  %v1545_v15 = vand.u32 4294901760, %v1014_v25  ;;  %v1546_v2 = vand.u32 4294901760, %v1230_v31  ;;  %v1280_v61 = vsub.f32 %v47_v14, %v1256_v38  ;;  %v69_v22 = vld [vmem:[#allocation5 + $0x90] sm:$0xff] }
  0x35   :  { %360 = vmatpush.msrb.mxu0 %v1541_v16  ;;  %231 = vmatpush.msra.mxu1 %v230_v41  ;;  %v541_v48 = vsub.f32 %v1204_v27, %v1542_v36  ;;  %v536_v41 = vand.u32 4294901760, %v535_v59  ;;  %v1535_v16 = vand.u32 4294901760, %v1242_v60  ;;  %v70_v36 = vld [vmem:[#allocation5 + $0x98] sm:$0xff]  ;;  %v1547_v25 = vand.u32 4294901760, %v1021_v29 }
  0x36   :  { %464 = vmatpush.msrb.mxu2 %v1127_v44  ;;  %531 = vmatpush.msrb.mxu3 %v530_v30  ;;  %v553_v59 = vsub.f32 %v1230_v31, %v1546_v2  ;;  %v548_v30 = vand.u32 4294901760, %v547_v62  ;;  %v1548_v14 = vand.u32 4294901760, %v1039_v35  ;;  %v68_v2 = vld [vmem:[#allocation5 + $0x88] sm:$0xff]  ;;  %v49_v35 = vld [vmem:[#allocation2 + $0x10] sm:$0xff] }
  0x37   :  { %364 = vmatpush.msrb.mxu0 %v1543_v19  ;;  %419 = vmatpush.msrb.mxu1 %v975_v3  ;;  %v1272_v3 = vand.u32 4294901760, %v71_v42  ;;  %v542_v20 = vand.u32 4294901760, %v541_v48  ;;  %v1534_v19 = vand.u32 4294901760, %v1254_v7  ;;  %v559_v48 = vsub.f32 %v1242_v60, %v1535_v16 }
  0x38   :  { %466 = vmatpush.msrb.mxu2 %v1142_v55  ;;  %537 = vmatpush.msrb.mxu3 %v536_v41  ;;  %v554_v41 = vand.u32 4294901760, %v553_v59  ;;  %v1315_v59 = vand.u32 4294901760, %v68_v2  ;;  %v1550_v16 = vand.u32 4294901760, %v1068_v52 }
  0x39   :  { %368 = vmatpush.msrb.mxu0 %v1545_v15  ;;  %421 = vmatpush.msrb.mxu1 %v977_v4  ;;  %v1285_v4 = vand.u32 4294901760, %v70_v36  ;;  %v570_v15 = vand.u32 4294901760, %v1267_v49  ;;  %v1296_v29 = vsub.f32 %v71_v42, %v1272_v3  ;;  %v565_v62 = vsub.f32 %v1254_v7, %v1534_v19  ;;  %v67_v19 = vld [vmem:[#allocation5 + $0x80] sm:$0xff] }
  0x3a   :  { %468 = vmatpush.msrb.mxu2 %v1163_v18  ;;  %543 = vmatpush.msrb.mxu3 %v542_v20  ;;  %v560_v42 = vand.u32 4294901760, %v559_v48  ;;  %v1332_v52 = vand.u32 4294901760, %v67_v19 }
  0x3b   :  { %372 = vmatpush.msrb.mxu0 %v1547_v25  ;;  %423 = vmatpush.msrb.mxu1 %v979_v5  ;;  %v1298_v5 = vand.u32 4294901760, %v69_v22  ;;  %v121_v25 = vand.u32 4294901760, %v1280_v61  ;;  %v571_v20 = vsub.f32 %v1267_v49, %v570_v15 }
  0x3c   :  { %470 = vmatpush.msrb.mxu2 %v1176_v47  ;;  %549 = vmatpush.msrb.mxu3 %v548_v30  ;;  %v566_v30 = vand.u32 4294901760, %v565_v62 }
  0x3d   :  { %376 = vmatpush.msrb.mxu0 %v1548_v14  ;;  %425 = vmatpush.msrb.mxu1 %v981_v9  ;;  %v1549_v14 = vand.u32 4294901760, %v1056_v46  ;;  %v1309_v9 = vsub.f32 %v70_v36, %v1285_v4  ;;  %v1322_v46 = vsub.f32 %v69_v22, %v1298_v5  ;;  %v1324_v36 = vand.u32 4294901760, %v49_v35 }
  0x3e   :  { %472 = vmatpush.msrb.mxu2 %v1191_v33  ;;  %555 = vmatpush.msrb.mxu3 %v554_v41  ;;  %v122_v48 = vsub.f32 %v1280_v61, %v121_v25  ;;  %v1336_v22 = vsub.f32 %v68_v2, %v1315_v59  ;;  %v1552_v41 = vand.u32 4294901760, %v1092_v1  ;;  %v1553_v2 = vand.u32 4294901760, %v1106_v26 }
  0x3f   :  { %380 = vmatpush.msrb.mxu0 %v1549_v14  ;;  %427 = vmatpush.msrb.mxu1 %v983_v10  ;;  %v576_v10 = vand.u32 4294901760, %v1296_v29  ;;  %v1551_v14 = vand.u32 4294901760, %v1080_v58  ;;  %v588_v58 = vand.u32 4294901760, %v1322_v46  ;;  %v128_v62 = vsub.f32 %v49_v35, %v1324_v36 }
  0x40   :  { %474 = vmatpush.msrb.mxu2 %v1206_v24  ;;  %561 = vmatpush.msrb.mxu3 %v560_v42  ;;  %v123_v42 = vand.u32 4294901760, %v122_v48  ;;  %v1354_v1 = vsub.f32 %v67_v19, %v1332_v52  ;;  %v594_v35 = vand.u32 4294901760, %v1336_v22 }
  0x41   :  { %384 = vmatpush.msrb.mxu0 %v1550_v16  ;;  %429 = vmatpush.msrb.mxu1 %v985_v11  ;;  %v582_v11 = vand.u32 4294901760, %v1309_v9  ;;  %v572_v16 = vand.u32 4294901760, %v571_v20  ;;  %v48_v20 = vld [vmem:[#allocation2 + $0x8] sm:$0xff]  ;;  %v129_v48 = vand.u32 4294901760, %v128_v62 }
  0x42   :  { %476 = vmatpush.msrb.mxu2 %v1219_v23  ;;  %567 = vmatpush.msrb.mxu3 %v566_v30  ;;  %v1554_v30 = vand.u32 4294901760, %v1120_v39  ;;  %v1365_v19 = vand.u32 4294901760, %v48_v20  ;;  %v600_v39 = vand.u32 4294901760, %v1354_v1 }
  0x43   :  { %388 = vmatpush.msrb.mxu0 %v1551_v14  ;;  %431 = vmatpush.msrb.mxu1 %v998_v17  ;;  %v577_v17 = vsub.f32 %v1296_v29, %v576_v10 }
  0x44   :  { %478 = vmatpush.msrb.mxu2 %v1232_v37  ;;  %573 = vmatpush.msrb.mxu3 %v572_v16 }
  0x45   :  { %392 = vmatpush.msrb.mxu0 %v1552_v41  ;;  %433 = vmatpush.msrb.mxu1 %v1006_v21  ;;  %v583_v21 = vsub.f32 %v1309_v9, %v582_v11  ;;  %v578_v26 = vand.u32 4294901760, %v577_v17  ;;  %v130_v41 = vsub.f32 %v128_v62, %v129_v48 }
  0x46   :  { %480 = vmatpush.msrb.mxu2 %v1244_v57  ;;  %124 = vmatmul.f32.vlgmr.msra.gmra.mxu0 %v123_v42 }
  0x47   :  { %396 = vmatpush.msrb.mxu0 %v1553_v2  ;;  %435 = vmatpush.msrb.mxu1 %v1018_v28  ;;  %v589_v28 = vsub.f32 %v1322_v46, %v588_v58  ;;  %v584_v14 = vand.u32 4294901760, %v583_v21  ;;  %v1557_v21 = vand.u32 4294901760, %v1125_v43 }
  0x48   :  { %291 = vmatmul.f32.vlgmr.msra.gmra.mxu2 %v1280_v61  ;;  %335 = vmatmul.f32.vlgmr.msra.gmra.mxu3 %v121_v25  ;;  %v1555_v61 = vand.u32 4294901760, %v1135_v53  ;;  %v1556_v25 = vand.u32 4294901760, %v1150_v6  ;;  %v1380_v53 = vsub.f32 %v48_v20, %v1365_v19  ;;  %v131_v6 = vand.u32 4294901760, %v130_v41 }
  0x49   :  { %400 = vmatpush.msrb.mxu0 %v1554_v30  ;;  %437 = vmatpush.msrb.mxu1 %v1036_v34  ;;  %v595_v34 = vsub.f32 %v1336_v22, %v594_v35  ;;  %v590_v16 = vand.u32 4294901760, %v589_v28 }
  0x4a   :  { %482 = vmatpush.msrb.mxu2 %v1272_v3  ;;  %579 = vmatpush.msrb.mxu3 %v578_v26  ;;  %v493_v42 = vand.u32 4294901760, %v1380_v53 }
  0x4b   :  { %404 = vmatpush.msrb.mxu0 %v1555_v61  ;;  %439 = vmatpush.msrb.mxu1 %v1053_v45  ;;  %v601_v45 = vsub.f32 %v1354_v1, %v600_v39  ;;  %v596_v17 = vand.u32 4294901760, %v595_v34 }
  0x4c   :  { %484 = vmatpush.msrb.mxu2 %v1285_v4  ;;  %233 = vmatmul.f32.vlgmr.msra.gmra.mxu1 %v1256_v38 }
  0x4d   :  { %408 = vmatpush.msrb.mxu0 %v1556_v25  ;;  %441 = vmatpush.msrb.mxu1 %v1065_v51  ;;  %v50_v51 = vld [vmem:[#allocation2 + $0x18] sm:$0xff]  ;;  %v602_v2 = vand.u32 4294901760, %v601_v45 }
  0x4e   :  { %486 = vmatpush.msrb.mxu2 %v1298_v5  ;;  %585 = vmatpush.msrb.mxu3 %v584_v14 }
  0x4f   :  { %615 = vmatpush.msra.mxu0 %v1125_v43  ;;  %443 = vmatpush.msrb.mxu1 %v1076_v56  ;;  %v1394_v56 = vand.u32 4294901760, %v50_v51  ;;  %v1560_v43 = vand.u32 4294901760, %v1156_v12 }
  0x50   :  { %488 = vmatpush.msrb.mxu2 %v1315_v59  ;;  %591 = vmatpush.msrb.mxu3 %v590_v16 }
  0x51   :  { %618 = vmatpush.msra.mxu0 %v1140_v54  ;;  %296 = vmatmul.f32.gmra.mxu2 %v128_v62  ;;  %v494_v62 = vsub.f32 %v1380_v53, %v493_v42  ;;  %v1407_v20 = vsub.f32 %v50_v51, %v1394_v56 }
  0x52   :  { %445 = vmatpush.msrb.mxu1 %v1088_v63  ;;  %490 = vmatpush.msrb.mxu2 %v1332_v52  ;;  %v1558_v63 = vand.u32 4294901760, %v1140_v54  ;;  %v1561_v54 = vand.u32 4294901760, %v1169_v0 }
  0x53   :  { %597 = vmatpush.msrb.mxu3 %v596_v17  ;;  %621 = vmatpush.msra.mxu0 %v1156_v12  ;;  %v495_v30 = vand.u32 4294901760, %v494_v62  ;;  %v501_v26 = vand.u32 4294901760, %v1407_v20 }
  0x54   :  { %720 = vmatpush.msra.mxu2 %v1557_v21  ;;  %132 = vmatmul.f32.gmra.mxu0 %v131_v6 }
  0x55   :  { %341 = vmatmul.f32.gmra.mxu3 %v129_v48  ;;  %447 = vmatpush.msrb.mxu1 %v1102_v13  ;;  %v1559_v13 = vld [vmem:[#allocation11_spill] sm:$0xff] }
  0x56   :  { %603 = vmatpush.msrb.mxu3 %v602_v2  ;;  %624 = vmatpush.msra.mxu0 %v1169_v0  ;;  %v502_v0 = vsub.f32 %v1407_v20, %v501_v26 }
  0x57   :  { %724 = vmatpush.msra.mxu2 %v1558_v63  ;;  %237 = vmatmul.f32.gmra.mxu1 %v1324_v36 }
  0x58   :  { %791 = vmatpush.msra.mxu3 %v1096_v8  ;;  %627 = vmatpush.msra.mxu0 %v1189_v40 }
  0x59   :  { %449 = vmatpush.msrb.mxu1 %v1559_v13  ;;  %728 = vmatpush.msra.mxu2 %v1560_v43 }
  0x5a   :  { %793 = vmatpush.msra.mxu3 %v1110_v32  ;;  %630 = vmatpush.msra.mxu0 %v1204_v27 }
  0x5b   :  { %673 = vmatpush.msra.mxu1 %v1096_v8  ;;  %732 = vmatpush.msra.mxu2 %v1561_v54  ;;  %v1562_v8 = vand.u32 4294901760, %v1189_v40  ;;  %v503_v40 = vand.u32 4294901760, %v502_v0 }
  0x5c   :  { %795 = vmatpush.msra.mxu3 %v1127_v44  ;;  %496 = vmatmul.f32.vlgmr.msrb.gmra.mxu2 %v495_v30 }
  0x5d   :  { %675 = vmatpush.msra.mxu1 %v1110_v32  ;;  %633 = vmatpush.msra.mxu0 %v1217_v50  ;;  %v1563_v32 = vand.u32 4294901760, %v1204_v27  ;;  %v1565_v27 = vand.u32 4294901760, %v1230_v31 }
  0x5e   :  { %736 = vmatpush.msra.mxu2 %v1562_v8  ;;  %797 = vmatpush.msra.mxu3 %v1142_v55 }
  0x5f   :  { %677 = vmatpush.msra.mxu1 %v1127_v44  ;;  %410 = vmatmul.f32.vlgmr.msrb.gmra.mxu0 %v1256_v38  ;;  %v1564_v44 = vand.u32 4294901760, %v1217_v50 }
  0x60   :  { %605 = vmatmul.f32.vlgmr.msrb.gmra.mxu3 %v1365_v19  ;;  %636 = vmatpush.msra.mxu0 %v1230_v31 }
  0x61   :  { %679 = vmatpush.msra.mxu1 %v1142_v55  ;;  %740 = vmatpush.msra.mxu2 %v1563_v32 }
  0x62   :  { %799 = vmatpush.msra.mxu3 %v1163_v18  ;;  %451 = vmatmul.f32.vlgmr.msrb.gmra.mxu1 %v1256_v38 }
  0x63   :  { %639 = vmatpush.msra.mxu0 %v1242_v60  ;;  %681 = vmatpush.msra.mxu1 %v1163_v18  ;;  %v1566_v18 = vand.u32 4294901760, %v1242_v60 }
  0x64   :  { %744 = vmatpush.msra.mxu2 %v1564_v44  ;;  %801 = vmatpush.msra.mxu3 %v1176_v47 }
  0x65   :  { %642 = vmatpush.msra.mxu0 %v1254_v7  ;;  %683 = vmatpush.msra.mxu1 %v1176_v47  ;;  %v1567_v47 = vand.u32 4294901760, %v1254_v7 }
  0x66   :  { %748 = vmatpush.msra.mxu2 %v1565_v27  ;;  %803 = vmatpush.msra.mxu3 %v1191_v33 }
  0x67   :  { %504 = vmatmul.f32.gmra.mxu2 %v503_v40  ;;  %645 = vmatpush.msra.mxu0 %v1267_v49 }
  0x68   :  { %685 = vmatpush.msra.mxu1 %v1191_v33  ;;  %752 = vmatpush.msra.mxu2 %v1566_v18  ;;  %v860_v33 = vld [vmem:[%s1513_s2] ss:$0 sm:$0xff]  ;;  %s945_s2 = smov [#allocation7]  }
  0x69   :  { %805 = vmatpush.msra.mxu3 %v1206_v24  ;;  %414 = vmatmul.f32.gmra.mxu0 %v1324_v36  ;;  %s837_s26 = sshll.u32 %s945_s2, 4  ;;  %s838_s26 = int_to_ptr.vmem [resolvable:$true] %s837_s26 }
  0x6a   :  { %609 = vmatmul.f32.gmra.mxu3 %v1394_v56  ;;  %648 = vmatpush.msra.mxu0 %v1296_v29 }
  0x6b   :  { %687 = vmatpush.msra.mxu1 %v1206_v24  ;;  %756 = vmatpush.msra.mxu2 %v1567_v47 }
  0x6c   :  { %807 = vmatpush.msra.mxu3 %v1219_v23  ;;  %455 = vmatmul.f32.gmra.mxu1 %v1324_v36 }
  0x6d   :  { %651 = vmatpush.msra.mxu0 %v1309_v9  ;;  %689 = vmatpush.msra.mxu1 %v1219_v23 }
  0x6e   :  { %760 = vmatpush.msra.mxu2 %v570_v15  ;;  %809 = vmatpush.msra.mxu3 %v1232_v37 }
  0x6f   :  { %654 = vmatpush.msra.mxu0 %v1322_v46  ;;  %691 = vmatpush.msra.mxu1 %v1232_v37 }
  0x70   :  { %764 = vmatpush.msra.mxu2 %v576_v10  ;;  %811 = vmatpush.msra.mxu3 %v1244_v57 }
  0x71   :  { %657 = vmatpush.msra.mxu0 %v1336_v22  ;;  %693 = vmatpush.msra.mxu1 %v1244_v57 }
  0x72   :  { %768 = vmatpush.msra.mxu2 %v582_v11  ;;  %813 = vmatpush.msra.mxu3 %v1272_v3 }
  0x73   :  { %660 = vmatpush.msra.mxu0 %v1354_v1  ;;  %695 = vmatpush.msra.mxu1 %v1272_v3 }
  0x74   :  { %772 = vmatpush.msra.mxu2 %v588_v58  ;;  %815 = vmatpush.msra.mxu3 %v1285_v4 }
  0x75   :  { %663 = vmatmul.f32.vlgmr.msra.gmra.mxu0 %v1380_v53  ;;  %697 = vmatpush.msra.mxu1 %v1285_v4 }
  0x76   :  { %776 = vmatpush.msra.mxu2 %v594_v35  ;;  %817 = vmatpush.msra.mxu3 %v1298_v5 }
  0x77   :  { %699 = vmatpush.msra.mxu1 %v1298_v5 }
  0x78   :  { %780 = vmatpush.msra.mxu2 %v600_v39  ;;  %819 = vmatpush.msra.mxu3 %v1315_v59 }
  0x79   :  { %782 = vmatmul.f32.vlgmr.msra.gmra.mxu2 %v1365_v19  ;;  %701 = vmatpush.msra.mxu1 %v1315_v59 }
  0x7a   :  { %821 = vmatpush.msra.mxu3 %v1332_v52 }
  0x7b   :  { %823 = vmatmul.f32.vlgmr.msra.gmra.mxu3 %v1365_v19  ;;  %703 = vmatpush.msra.mxu1 %v1332_v52 }
  0x7c   :  { %707 = vmatmul.f32.vlgmr.msra.gmra.mxu1 %v493_v42 }
  0x7d   :  { %668 = vmatmul.f32.gmra.mxu0 %v1407_v20 }
  0x81   :  { %786 = vmatmul.f32.gmra.mxu2 %v1394_v56 }
  0x83   :  { %827 = vmatmul.f32.gmra.mxu3 %v1394_v56 }
  0x84   :  { %713 = vmatmul.f32.gmra.mxu1 %v501_v26 }
  0xc3   :  { %v125_v23 = vpop.f32.mrf.mxu0 }
  0xc4   :  { %v126_v12 = vadd.f32 %v860_v33, %v125_v23 }
  0xc9   :  { %v234_v24 = vpop.f32.mrf.mxu1 }
  0xca   :  { %v235_v57 = vadd.f32 %v234_v24, %v126_v12 }
  0xcb   :  { %v292_v37 = vpop.f32.mrf.mxu2  ;;  %v336_v55 = vpop.f32.mrf.mxu3 }
  0xcc   :  { %v293_v38 = vadd.f32 %v292_v37, %v235_v57 }
  0xce   :  { %v337_v4 = vadd.f32 %v336_v55, %v293_v38 }
  0xd1   :  { %v133_v50 = vpop.f32.mrf.mxu0 }
  0xd2   :  { %v134_v49 = vadd.f32 %v860_v33, %v133_v50 }
  0xd4   :  { %v238_v31 = vpop.f32.mrf.mxu1  ;;  %v297_v60 = vpop.f32.mrf.mxu2 }
  0xd5   :  { %v239_v15 = vadd.f32 %v238_v31, %v134_v49 }
  0xd7   :  { %v298_v5 = vadd.f32 %v297_v60, %v239_v15 }
  0xd8   :  { %v342_v3 = vpop.f32.mrf.mxu3 }
  0xd9   :  { %v343_v36 = vadd.f32 %v342_v3, %v298_v5 }
  0xdc   :  { %v411_v7 = vpop.f32.mrf.mxu0 }
  0xdd   :  { %v412_v9 = vadd.f32 %v411_v7, %v337_v4 }
  0xdf   :  { %v452_v29 = vpop.f32.mrf.mxu1  ;;  %v497_v59 = vpop.f32.mrf.mxu2 }
  0xe0   :  { %v453_v11 = vadd.f32 %v452_v29, %v412_v9 }
  0xe2   :  { %v498_v22 = vadd.f32 %v497_v59, %v453_v11 }
  0xe3   :  { %v606_v46 = vpop.f32.mrf.mxu3 }
  0xe4   :  { %v607_v28 = vadd.f32 %v606_v46, %v498_v22 }
  0xe6   :  { %v415_v10 = vpop.f32.mrf.mxu0 }
  0xe7   :  { %v416_v58 = vadd.f32 %v415_v10, %v343_v36 }
  0xe9   :  { %v456_v52 = vpop.f32.mrf.mxu1 }
  0xea   :  { %v505_v35 = vpop.f32.mrf.mxu2  ;;  %v457_v48 = vadd.f32 %v456_v52, %v416_v58 }
  0xec   :  { %v506_v39 = vadd.f32 %v505_v35, %v457_v48 }
  0xed   :  { %v610_v19 = vpop.f32.mrf.mxu3 }
  0xee   :  { %v611_v53 = vadd.f32 %v610_v19, %v506_v39 }
  0xf2   :  { %v664_v1 = vpop.f32.mrf.mxu0 }
  0xf3   :  { %v665_v61 = vadd.f32 %v664_v1, %v607_v28 }
  0xf9   :  { %v708_v14 = vpop.f32.mrf.mxu1 }
  0xfa   :  { %v709_v34 = vadd.f32 %v708_v14, %v665_v61  ;;  %v669_v41 = vpop.f32.mrf.mxu0 }
  0xfb   :  { %v670_v6 = vadd.f32 %v669_v41, %v611_v53 }
  0xfc   :  { %v783_v16 = vpop.f32.mrf.mxu2 }
  0xfd   :  { %v784_v25 = vadd.f32 %v783_v16, %v709_v34 }
  0xfe   :  { %v824_v45 = vpop.f32.mrf.mxu3 }
  0xff   :  { %v825_v17 = vadd.f32 %v824_v45, %v784_v25 }
 0x101   :  { %831 = vst [vmem:[#allocation7] sm:$0xff] %v825_v17  ;;  %v714_v51 = vpop.f32.mrf.mxu1 }
 0x102   :  { %v715_v42 = vadd.f32 %v714_v51, %v670_v6 }
 0x104   :  { %v787_v2 = vpop.f32.mrf.mxu2 }
 0x105   :  { %v788_v56 = vadd.f32 %v787_v2, %v715_v42 }
 0x106   :  { %v828_v21 = vpop.f32.mrf.mxu3 }
 0x107   :  { %v829_v62 = vadd.f32 %v828_v21, %v788_v56 }
 0x109   :  { %832 = vst [vmem:[#allocation7 + $0x8] sm:$0xff] %v829_v62 }
 0x10a   :  { %845 = dma.vmem_to_hbm [thread:$0]  %s838_s26, 256, %s840_s29, [#allocation4], %s943_s24, %s943_s24, %s944_s25  }
 0x10b   :  { %937 = dma.done.wait [#allocation4], 256  }
 0x10c   :  { %938 = vsyncadd [#allocation4], 4294967040 }
 0x10d   :  { %850 = vsyncpa [#allocation3], 1 }
 0x10e   :  { %851 = vsyncpa [#allocation6], 1 }
 0x10f   :  { %852 = vsyncpa [#allocation4], 1 }

</bundles_post_ra>
